<compile_context>
chip_gen: v5e
topology: v5e:2x2
jax: 0.10.0
libtpu: 0.0.40
codegen_flags: <defaults>
</compile_context>

<pallas_src>
import jax
import jax.numpy as jnp
from jax import lax
from jax.experimental import pallas as pl
from jax.experimental.pallas import tpu as pltpu

# norse default parameters
DT = 1e-3
TAU_SYN_INV = 200.0   # 1 / 5e-3
TAU_MEM_INV = 100.0   # 1 / 1e-2
V_LEAK = 0.0
V_TH = 1.0
V_RESET = 0.0


def _round_up(n, m):
    return ((n + m - 1) // m) * m


def _readout_coeffs(T):
    """Closed-form coefficients of the linear LI readout.

    With a = dt*tau_mem_inv, b = dt*tau_syn_inv, zero initial state and v_leak=0:
        i_jump_t = sum_{s<=t} (1-b)^(t-s) J_s,    J_s = z_s @ W_out^T
        v_T      = a * sum_t (1-a)^(T-t) i_jump_t = sum_s c_s J_s
        c_s      = a * sum_{u=s..T} (1-a)^(T-u) (1-b)^(u-s)
    """
    a = DT * TAU_MEM_INV
    b = DT * TAU_SYN_INV
    coeffs = []
    for s in range(1, T + 1):
        c = 0.0
        for u in range(s, T + 1):
            c += a * ((1.0 - a) ** (T - u)) * ((1.0 - b) ** (u - s))
        coeffs.append(c)
    return coeffs


def _make_snn_kernel(T, Bp, Kp, Fp, Cp, n_output, coeffs):
    """Kernel closure over the (static) padded problem sizes and readout coeffs."""
    a = DT * TAU_MEM_INV
    b = DT * TAU_SYN_INV

    def kernel(x_ref, w_in_ref, w_rec_ref, w_out_ref, out_ref, xp_sc):
        # ---- Phase 1: hoisted input projection (one MXU op for all timesteps) ----
        # x_ref: (T*Bp, Kp), w_in_ref: (Kp, Fp) -> xp_sc: (T*Bp, Fp)
        xp_sc[...] = jnp.dot(x_ref[...], w_in_ref[...],
                             preferred_element_type=jnp.float32)

        # ---- Phase 2: LIF recurrence, fully unrolled (T is static) ----
        # Only one dependent MXU op per step (z_prev @ W_rec) on the critical path;
        # the readout is folded into a running weighted spike sum.
        z = jnp.zeros((Bp, Fp), jnp.float32)
        v = jnp.zeros((Bp, Fp), jnp.float32)
        i = jnp.zeros((Bp, Fp), jnp.float32)
        z_acc = jnp.zeros((Bp, Fp), jnp.float32)
        for t in range(T):
            v_dec = v + a * ((V_LEAK - v) + i)
            i_dec = i - b * i
            z_new = (v_dec - V_TH > 0.0).astype(jnp.float32)
            v = (1.0 - z_new) * v_dec + z_new * V_RESET
            i = (i_dec
                 + xp_sc[pl.ds(t * Bp, Bp), :]
                 + jnp.dot(z, w_rec_ref[...], preferred_element_type=jnp.float32))
            z_acc = z_acc + coeffs[t] * z_new
            z = z_new

        # ---- Phase 3: closed-form LI readout: v_out = (sum_t c_t z_t) @ W_out ----
        vo = jnp.dot(z_acc, w_out_ref[...], preferred_element_type=jnp.float32)

        # ---- Phase 4: mask padded classes, log_softmax over real classes ----
        col = lax.broadcasted_iota(jnp.int32, (Bp, Cp), 1)
        v_final = jnp.where(col < n_output, vo, -1e30)
        m = jnp.max(v_final, axis=1, keepdims=True)
        shifted = v_final - m
        lse = jnp.log(jnp.sum(jnp.exp(shifted), axis=1, keepdims=True))
        out_ref[...] = shifted - lse

    return kernel


def snn_forward(x, w_in_t, w_rec_t, w_out_t):
    """x: (T, B, n_input); weights pre-transposed to (in, out) layout."""
    T, B, n_input = x.shape
    n_features = w_in_t.shape[1]
    n_output = w_out_t.shape[1]

    # Pad batch to sublane multiple (8) and input/feature/class dims to lane
    # multiples (128) so every MXU operand is tile-aligned.
    Bp = _round_up(B, 8)
    Kp = _round_up(n_input, 128)
    Fp = _round_up(n_features, 128)
    Cp = _round_up(n_output, 128)

    x_p = jnp.pad(x.astype(jnp.float32),
                  ((0, 0), (0, Bp - B), (0, Kp - n_input)))
    x2d = x_p.reshape(T * Bp, Kp)
    w_in_p = jnp.pad(w_in_t.astype(jnp.float32),
                     ((0, Kp - n_input), (0, Fp - n_features)))
    w_rec_p = jnp.pad(w_rec_t.astype(jnp.float32),
                      ((0, Fp - n_features), (0, Fp - n_features)))
    w_out_p = jnp.pad(w_out_t.astype(jnp.float32),
                      ((0, Fp - n_features), (0, Cp - n_output)))

    coeffs = _readout_coeffs(T)
    kernel = _make_snn_kernel(T, Bp, Kp, Fp, Cp, n_output, coeffs)

    out_p = pl.pallas_call(
        kernel,
        out_shape=jax.ShapeDtypeStruct((Bp, Cp), jnp.float32),
        grid=(1,),
        in_specs=[
            pl.BlockSpec((T * Bp, Kp), lambda i: (0, 0)),   # whole sequence
            pl.BlockSpec((Kp, Fp), lambda i: (0, 0)),       # W_in  (in, out)
            pl.BlockSpec((Fp, Fp), lambda i: (0, 0)),       # W_rec (in, out)
            pl.BlockSpec((Fp, Cp), lambda i: (0, 0)),       # W_out (in, out)
        ],
        out_specs=pl.BlockSpec((Bp, Cp), lambda i: (0, 0)),
        scratch_shapes=[
            pltpu.VMEM((T * Bp, Fp), jnp.float32),   # X @ W_in for all timesteps
        ],
        compiler_params=pltpu.CompilerParams(
            dimension_semantics=("arbitrary",)),
    )(x2d, w_in_p, w_rec_p, w_out_p)

    return out_p[:B, :n_output]


def snn_forward_ref(x, w_in_t, w_rec_t, w_out_t):
    """Pure-JAX reference of the same forward pass (straightforward recurrence)."""
    T, B, n_input = x.shape
    n_features = w_in_t.shape[1]
    n_output = w_out_t.shape[1]

    def step(carry, x_t):
        z, v, i, vo, io = carry
        v_dec = v + DT * TAU_MEM_INV * ((V_LEAK - v) + i)
        i_dec = i - DT * TAU_SYN_INV * i
        z_new = (v_dec - V_TH > 0.0).astype(jnp.float32)
        v_new = (1.0 - z_new) * v_dec + z_new * V_RESET
        i_new = (i_dec
                 + jnp.dot(x_t, w_in_t, preferred_element_type=jnp.float32)
                 + jnp.dot(z, w_rec_t, preferred_element_type=jnp.float32))
        i_jump = io + jnp.dot(z_new, w_out_t, preferred_element_type=jnp.float32)
        vo_new = vo + DT * TAU_MEM_INV * ((V_LEAK - vo) + i_jump)
        io_new = i_jump - DT * TAU_SYN_INV * i_jump
        return (z_new, v_new, i_new, vo_new, io_new), None

    init = (jnp.zeros((B, n_features), jnp.float32),
            jnp.zeros((B, n_features), jnp.float32),
            jnp.zeros((B, n_features), jnp.float32),
            jnp.zeros((B, n_output), jnp.float32),
            jnp.zeros((B, n_output), jnp.float32))
    (_, _, _, vo, _), _ = jax.lax.scan(step, init, x)
    return jax.nn.log_softmax(vo, axis=1)


if __name__ == "__main__":
    # Small shapes consistent with the module: x is (seq, batch, n_input),
    # module defaults n_features=128, n_input=80, n_output=10.
    seq_length, batch_size = 8, 4
    n_input, n_features, n_output = 80, 128, 10

    key = jax.random.PRNGKey(0)
    kx, k1, k2, k3 = jax.random.split(key, 4)

    x = jax.random.normal(kx, (seq_length, batch_size, n_input), jnp.float32)

    # Deterministic parameter init (norse-style randn * sqrt(2/in)); torch layout
    # (out, in) is pre-transposed to (in, out) for the kernel.
    w_in = jax.random.normal(k1, (n_features, n_input), jnp.float32) * jnp.sqrt(2.0 / n_input)
    w_rec = jax.random.normal(k2, (n_features, n_features), jnp.float32) * jnp.sqrt(2.0 / n_features)
    w_out = jax.random.normal(k3, (n_output, n_features), jnp.float32) * jnp.sqrt(2.0 / n_features)

    out = snn_forward(x, w_in.T, w_rec.T, w_out.T)
    out = jax.block_until_ready(out)

    ref = snn_forward_ref(x, w_in.T, w_rec.T, w_out.T)
    assert out.shape == (batch_size, n_output)
    assert jnp.allclose(out, ref, atol=1e-4, rtol=1e-4), "mismatch vs reference"

    print("KERNEL_OK")
</pallas_src>

<mosaic_0001>
module attributes {stable_mosaic.version = 11 : i64} {
  func.func @kernel(%arg0: i32, %arg1: memref<64x128xf32, #tpu.memory_space<vmem>>, %arg2: memref<128x128xf32, #tpu.memory_space<vmem>>, %arg3: memref<128x128xf32, #tpu.memory_space<vmem>>, %arg4: memref<128x128xf32, #tpu.memory_space<vmem>>, %arg5: memref<8x128xf32, #tpu.memory_space<vmem>>, %arg6: memref<64x128xf32, #tpu.memory_space<vmem>>) attributes {dimension_semantics = [#tpu.dimension_semantics<arbitrary>], iteration_bounds = array<i64: 1>, scalar_prefetch = 0 : i64, scratch_operands = 1 : i64, tpu.core_type = #tpu.core_type<tc>, window_params = [{pipeline_mode = #tpu.pipeline_mode<synchronous>, transform_indices = @transform_0, window_bounds = array<i64: 64, 128>}, {pipeline_mode = #tpu.pipeline_mode<synchronous>, transform_indices = @transform_1, window_bounds = array<i64: 128, 128>}, {pipeline_mode = #tpu.pipeline_mode<synchronous>, transform_indices = @transform_2, window_bounds = array<i64: 128, 128>}, {pipeline_mode = #tpu.pipeline_mode<synchronous>, transform_indices = @transform_3, window_bounds = array<i64: 128, 128>}, {pipeline_mode = #tpu.pipeline_mode<synchronous>, transform_indices = @transform_4, window_bounds = array<i64: 8, 128>}]} {
    %c0 = arith.constant 0 : index
    %c0_0 = arith.constant 0 : index
    %0 = vector.load %arg1[%c0, %c0_0] : memref<64x128xf32, #tpu.memory_space<vmem>>, vector<64x128xf32>
    %c0_1 = arith.constant 0 : index
    %c0_2 = arith.constant 0 : index
    %1 = vector.load %arg2[%c0_1, %c0_2] : memref<128x128xf32, #tpu.memory_space<vmem>>, vector<128x128xf32>
    %cst = arith.constant dense<0.000000e+00> : vector<64x128xf32>
    %2 = tpu.matmul %0, %1, %cst {dimension_numbers = #tpu.dot_dimension_numbers<[1], [0], [0], [1], [0, 0, 1, 1], [], []>} : vector<64x128xf32>, vector<128x128xf32>, vector<64x128xf32> -> vector<64x128xf32>
    %c0_3 = arith.constant 0 : index
    %c0_4 = arith.constant 0 : index
    %3 = vector.load %arg6[%c0_3, %c0_4] : memref<64x128xf32, #tpu.memory_space<vmem>>, vector<64x128xf32>
    tpu.vector_store %arg6[%c0_3, %c0_4], %2 {strides = array<i32>} : memref<64x128xf32, #tpu.memory_space<vmem>>, vector<64x128xf32>,
    %cst_5 = arith.constant 0.000000e+00 : f32
    %4 = vector.broadcast %cst_5 : f32 to vector<8x128xf32>
    %cst_6 = arith.constant 0.000000e+00 : f32
    %5 = vector.broadcast %cst_6 : f32 to vector<8x128xf32>
    %cst_7 = arith.constant 0.000000e+00 : f32
    %6 = vector.broadcast %cst_7 : f32 to vector<8x128xf32>
    %cst_8 = arith.constant 0.000000e+00 : f32
    %7 = vector.broadcast %cst_8 : f32 to vector<8x128xf32>
    %cst_9 = arith.constant 0.000000e+00 : f32
    %8 = vector.broadcast %cst_9 : f32 to vector<8x128xf32>
    %9 = arith.subf %8, %5 : vector<8x128xf32>
    %10 = arith.addf %9, %6 : vector<8x128xf32>
    %cst_10 = arith.constant 1.000000e-01 : f32
    %11 = vector.broadcast %cst_10 : f32 to vector<8x128xf32>
    %12 = arith.mulf %11, %10 : vector<8x128xf32>
    %13 = arith.addf %5, %12 : vector<8x128xf32>
    %cst_11 = arith.constant 2.000000e-01 : f32
    %14 = vector.broadcast %cst_11 : f32 to vector<8x128xf32>
    %15 = arith.mulf %14, %6 : vector<8x128xf32>
    %16 = arith.subf %6, %15 : vector<8x128xf32>
    %cst_12 = arith.constant 1.000000e+00 : f32
    %17 = vector.broadcast %cst_12 : f32 to vector<8x128xf32>
    %18 = arith.subf %13, %17 : vector<8x128xf32>
    %cst_13 = arith.constant 0.000000e+00 : f32
    %19 = vector.broadcast %cst_13 : f32 to vector<8x128xf32>
    %20 = arith.cmpf ogt, %18, %19 : vector<8x128xf32>
    %21 = arith.extui %20 : vector<8x128xi1> to vector<8x128xi32>
    %22 = arith.sitofp %21 : vector<8x128xi32> to vector<8x128xf32>
    %cst_14 = arith.constant 1.000000e+00 : f32
    %23 = vector.broadcast %cst_14 : f32 to vector<8x128xf32>
    %24 = arith.subf %23, %22 : vector<8x128xf32>
    %25 = arith.mulf %24, %13 : vector<8x128xf32>
    %cst_15 = arith.constant 0.000000e+00 : f32
    %26 = vector.broadcast %cst_15 : f32 to vector<8x128xf32>
    %27 = arith.mulf %22, %26 : vector<8x128xf32>
    %28 = arith.addf %25, %27 : vector<8x128xf32>
    %c0_16 = arith.constant 0 : index
    %c0_17 = arith.constant 0 : index
    %29 = vector.load %arg6[%c0_16, %c0_17] : memref<64x128xf32, #tpu.memory_space<vmem>>, vector<8x128xf32>
    %30 = arith.addf %16, %29 : vector<8x128xf32>
    %c0_18 = arith.constant 0 : index
    %c0_19 = arith.constant 0 : index
    %31 = vector.load %arg3[%c0_18, %c0_19] : memref<128x128xf32, #tpu.memory_space<vmem>>, vector<128x128xf32>
    %cst_20 = arith.constant dense<0.000000e+00> : vector<8x128xf32>
    %32 = tpu.matmul %4, %31, %cst_20 {dimension_numbers = #tpu.dot_dimension_numbers<[1], [0], [0], [1], [0, 0, 1, 1], [], []>} : vector<8x128xf32>, vector<128x128xf32>, vector<8x128xf32> -> vector<8x128xf32>
    %33 = arith.addf %30, %32 : vector<8x128xf32>
    %cst_21 = arith.constant 0.262695044 : f32
    %34 = vector.broadcast %cst_21 : f32 to vector<8x128xf32>
    %35 = arith.mulf %34, %22 : vector<8x128xf32>
    %36 = arith.addf %7, %35 : vector<8x128xf32>
    %cst_22 = arith.constant 0.000000e+00 : f32
    %37 = vector.broadcast %cst_22 : f32 to vector<8x128xf32>
    %38 = arith.subf %37, %28 : vector<8x128xf32>
    %39 = arith.addf %38, %33 : vector<8x128xf32>
    %cst_23 = arith.constant 1.000000e-01 : f32
    %40 = vector.broadcast %cst_23 : f32 to vector<8x128xf32>
    %41 = arith.mulf %40, %39 : vector<8x128xf32>
    %42 = arith.addf %28, %41 : vector<8x128xf32>
    %cst_24 = arith.constant 2.000000e-01 : f32
    %43 = vector.broadcast %cst_24 : f32 to vector<8x128xf32>
    %44 = arith.mulf %43, %33 : vector<8x128xf32>
    %45 = arith.subf %33, %44 : vector<8x128xf32>
    %cst_25 = arith.constant 1.000000e+00 : f32
    %46 = vector.broadcast %cst_25 : f32 to vector<8x128xf32>
    %47 = arith.subf %42, %46 : vector<8x128xf32>
    %cst_26 = arith.constant 0.000000e+00 : f32
    %48 = vector.broadcast %cst_26 : f32 to vector<8x128xf32>
    %49 = arith.cmpf ogt, %47, %48 : vector<8x128xf32>
    %50 = arith.extui %49 : vector<8x128xi1> to vector<8x128xi32>
    %51 = arith.sitofp %50 : vector<8x128xi32> to vector<8x128xf32>
    %cst_27 = arith.constant 1.000000e+00 : f32
    %52 = vector.broadcast %cst_27 : f32 to vector<8x128xf32>
    %53 = arith.subf %52, %51 : vector<8x128xf32>
    %54 = arith.mulf %53, %42 : vector<8x128xf32>
    %cst_28 = arith.constant 0.000000e+00 : f32
    %55 = vector.broadcast %cst_28 : f32 to vector<8x128xf32>
    %56 = arith.mulf %51, %55 : vector<8x128xf32>
    %57 = arith.addf %54, %56 : vector<8x128xf32>
    %c8 = arith.constant 8 : index
    %c0_29 = arith.constant 0 : index
    %58 = vector.load %arg6[%c8, %c0_29] : memref<64x128xf32, #tpu.memory_space<vmem>>, vector<8x128xf32>
    %59 = arith.addf %45, %58 : vector<8x128xf32>
    %c0_30 = arith.constant 0 : index
    %c0_31 = arith.constant 0 : index
    %60 = vector.load %arg3[%c0_30, %c0_31] : memref<128x128xf32, #tpu.memory_space<vmem>>, vector<128x128xf32>
    %cst_32 = arith.constant dense<0.000000e+00> : vector<8x128xf32>
    %61 = tpu.matmul %22, %60, %cst_32 {dimension_numbers = #tpu.dot_dimension_numbers<[1], [0], [0], [1], [0, 0, 1, 1], [], []>} : vector<8x128xf32>, vector<128x128xf32>, vector<8x128xf32> -> vector<8x128xf32>
    %62 = arith.addf %59, %61 : vector<8x128xf32>
    %cst_33 = arith.constant 0.268581688 : f32
    %63 = vector.broadcast %cst_33 : f32 to vector<8x128xf32>
    %64 = arith.mulf %63, %51 : vector<8x128xf32>
    %65 = arith.addf %36, %64 : vector<8x128xf32>
    %cst_34 = arith.constant 0.000000e+00 : f32
    %66 = vector.broadcast %cst_34 : f32 to vector<8x128xf32>
    %67 = arith.subf %66, %57 : vector<8x128xf32>
    %68 = arith.addf %67, %62 : vector<8x128xf32>
    %cst_35 = arith.constant 1.000000e-01 : f32
    %69 = vector.broadcast %cst_35 : f32 to vector<8x128xf32>
    %70 = arith.mulf %69, %68 : vector<8x128xf32>
    %71 = arith.addf %57, %70 : vector<8x128xf32>
    %cst_36 = arith.constant 2.000000e-01 : f32
    %72 = vector.broadcast %cst_36 : f32 to vector<8x128xf32>
    %73 = arith.mulf %72, %62 : vector<8x128xf32>
    %74 = arith.subf %62, %73 : vector<8x128xf32>
    %cst_37 = arith.constant 1.000000e+00 : f32
    %75 = vector.broadcast %cst_37 : f32 to vector<8x128xf32>
    %76 = arith.subf %71, %75 : vector<8x128xf32>
    %cst_38 = arith.constant 0.000000e+00 : f32
    %77 = vector.broadcast %cst_38 : f32 to vector<8x128xf32>
    %78 = arith.cmpf ogt, %76, %77 : vector<8x128xf32>
    %79 = arith.extui %78 : vector<8x128xi1> to vector<8x128xi32>
    %80 = arith.sitofp %79 : vector<8x128xi32> to vector<8x128xf32>
    %cst_39 = arith.constant 1.000000e+00 : f32
    %81 = vector.broadcast %cst_39 : f32 to vector<8x128xf32>
    %82 = arith.subf %81, %80 : vector<8x128xf32>
    %83 = arith.mulf %82, %71 : vector<8x128xf32>
    %cst_40 = arith.constant 0.000000e+00 : f32
    %84 = vector.broadcast %cst_40 : f32 to vector<8x128xf32>
    %85 = arith.mulf %80, %84 : vector<8x128xf32>
    %86 = arith.addf %83, %85 : vector<8x128xf32>
    %c16 = arith.constant 16 : index
    %c0_41 = arith.constant 0 : index
    %87 = vector.load %arg6[%c16, %c0_41] : memref<64x128xf32, #tpu.memory_space<vmem>>, vector<8x128xf32>
    %88 = arith.addf %74, %87 : vector<8x128xf32>
    %c0_42 = arith.constant 0 : index
    %c0_43 = arith.constant 0 : index
    %89 = vector.load %arg3[%c0_42, %c0_43] : memref<128x128xf32, #tpu.memory_space<vmem>>, vector<128x128xf32>
    %cst_44 = arith.constant dense<0.000000e+00> : vector<8x128xf32>
    %90 = tpu.matmul %51, %89, %cst_44 {dimension_numbers = #tpu.dot_dimension_numbers<[1], [0], [0], [1], [0, 0, 1, 1], [], []>} : vector<8x128xf32>, vector<128x128xf32>, vector<8x128xf32> -> vector<8x128xf32>
    %91 = arith.addf %88, %90 : vector<8x128xf32>
    %cst_45 = arith.constant 2.692970e-01 : f32
    %92 = vector.broadcast %cst_45 : f32 to vector<8x128xf32>
    %93 = arith.mulf %92, %80 : vector<8x128xf32>
    %94 = arith.addf %65, %93 : vector<8x128xf32>
    %cst_46 = arith.constant 0.000000e+00 : f32
    %95 = vector.broadcast %cst_46 : f32 to vector<8x128xf32>
    %96 = arith.subf %95, %86 : vector<8x128xf32>
    %97 = arith.addf %96, %91 : vector<8x128xf32>
    %cst_47 = arith.constant 1.000000e-01 : f32
    %98 = vector.broadcast %cst_47 : f32 to vector<8x128xf32>
    %99 = arith.mulf %98, %97 : vector<8x128xf32>
    %100 = arith.addf %86, %99 : vector<8x128xf32>
    %cst_48 = arith.constant 2.000000e-01 : f32
    %101 = vector.broadcast %cst_48 : f32 to vector<8x128xf32>
    %102 = arith.mulf %101, %91 : vector<8x128xf32>
    %103 = arith.subf %91, %102 : vector<8x128xf32>
    %cst_49 = arith.constant 1.000000e+00 : f32
    %104 = vector.broadcast %cst_49 : f32 to vector<8x128xf32>
    %105 = arith.subf %100, %104 : vector<8x128xf32>
    %cst_50 = arith.constant 0.000000e+00 : f32
    %106 = vector.broadcast %cst_50 : f32 to vector<8x128xf32>
    %107 = arith.cmpf ogt, %105, %106 : vector<8x128xf32>
    %108 = arith.extui %107 : vector<8x128xi1> to vector<8x128xi32>
    %109 = arith.sitofp %108 : vector<8x128xi32> to vector<8x128xf32>
    %cst_51 = arith.constant 1.000000e+00 : f32
    %110 = vector.broadcast %cst_51 : f32 to vector<8x128xf32>
    %111 = arith.subf %110, %109 : vector<8x128xf32>
    %112 = arith.mulf %111, %100 : vector<8x128xf32>
    %cst_52 = arith.constant 0.000000e+00 : f32
    %113 = vector.broadcast %cst_52 : f32 to vector<8x128xf32>
    %114 = arith.mulf %109, %113 : vector<8x128xf32>
    %115 = arith.addf %112, %114 : vector<8x128xf32>
    %c24 = arith.constant 24 : index
    %c0_53 = arith.constant 0 : index
    %116 = vector.load %arg6[%c24, %c0_53] : memref<64x128xf32, #tpu.memory_space<vmem>>, vector<8x128xf32>
    %117 = arith.addf %103, %116 : vector<8x128xf32>
    %c0_54 = arith.constant 0 : index
    %c0_55 = arith.constant 0 : index
    %118 = vector.load %arg3[%c0_54, %c0_55] : memref<128x128xf32, #tpu.memory_space<vmem>>, vector<128x128xf32>
    %cst_56 = arith.constant dense<0.000000e+00> : vector<8x128xf32>
    %119 = tpu.matmul %80, %118, %cst_56 {dimension_numbers = #tpu.dot_dimension_numbers<[1], [0], [0], [1], [0, 0, 1, 1], [], []>} : vector<8x128xf32>, vector<128x128xf32>, vector<8x128xf32> -> vector<8x128xf32>
    %120 = arith.addf %117, %119 : vector<8x128xf32>
    %cst_57 = arith.constant 2.628100e-01 : f32
    %121 = vector.broadcast %cst_57 : f32 to vector<8x128xf32>
    %122 = arith.mulf %121, %109 : vector<8x128xf32>
    %123 = arith.addf %94, %122 : vector<8x128xf32>
    %cst_58 = arith.constant 0.000000e+00 : f32
    %124 = vector.broadcast %cst_58 : f32 to vector<8x128xf32>
    %125 = arith.subf %124, %115 : vector<8x128xf32>
    %126 = arith.addf %125, %120 : vector<8x128xf32>
    %cst_59 = arith.constant 1.000000e-01 : f32
    %127 = vector.broadcast %cst_59 : f32 to vector<8x128xf32>
    %128 = arith.mulf %127, %126 : vector<8x128xf32>
    %129 = arith.addf %115, %128 : vector<8x128xf32>
    %cst_60 = arith.constant 2.000000e-01 : f32
    %130 = vector.broadcast %cst_60 : f32 to vector<8x128xf32>
    %131 = arith.mulf %130, %120 : vector<8x128xf32>
    %132 = arith.subf %120, %131 : vector<8x128xf32>
    %cst_61 = arith.constant 1.000000e+00 : f32
    %133 = vector.broadcast %cst_61 : f32 to vector<8x128xf32>
    %134 = arith.subf %129, %133 : vector<8x128xf32>
    %cst_62 = arith.constant 0.000000e+00 : f32
    %135 = vector.broadcast %cst_62 : f32 to vector<8x128xf32>
    %136 = arith.cmpf ogt, %134, %135 : vector<8x128xf32>
    %137 = arith.extui %136 : vector<8x128xi1> to vector<8x128xi32>
    %138 = arith.sitofp %137 : vector<8x128xi32> to vector<8x128xf32>
    %cst_63 = arith.constant 1.000000e+00 : f32
    %139 = vector.broadcast %cst_63 : f32 to vector<8x128xf32>
    %140 = arith.subf %139, %138 : vector<8x128xf32>
    %141 = arith.mulf %140, %129 : vector<8x128xf32>
    %cst_64 = arith.constant 0.000000e+00 : f32
    %142 = vector.broadcast %cst_64 : f32 to vector<8x128xf32>
    %143 = arith.mulf %138, %142 : vector<8x128xf32>
    %144 = arith.addf %141, %143 : vector<8x128xf32>
    %c32 = arith.constant 32 : index
    %c0_65 = arith.constant 0 : index
    %145 = vector.load %arg6[%c32, %c0_65] : memref<64x128xf32, #tpu.memory_space<vmem>>, vector<8x128xf32>
    %146 = arith.addf %132, %145 : vector<8x128xf32>
    %c0_66 = arith.constant 0 : index
    %c0_67 = arith.constant 0 : index
    %147 = vector.load %arg3[%c0_66, %c0_67] : memref<128x128xf32, #tpu.memory_space<vmem>>, vector<128x128xf32>
    %cst_68 = arith.constant dense<0.000000e+00> : vector<8x128xf32>
    %148 = tpu.matmul %109, %147, %cst_68 {dimension_numbers = #tpu.dot_dimension_numbers<[1], [0], [0], [1], [0, 0, 1, 1], [], []>} : vector<8x128xf32>, vector<128x128xf32>, vector<8x128xf32> -> vector<8x128xf32>
    %149 = arith.addf %146, %148 : vector<8x128xf32>
    %cst_69 = arith.constant 2.465000e-01 : f32
    %150 = vector.broadcast %cst_69 : f32 to vector<8x128xf32>
    %151 = arith.mulf %150, %138 : vector<8x128xf32>
    %152 = arith.addf %123, %151 : vector<8x128xf32>
    %cst_70 = arith.constant 0.000000e+00 : f32
    %153 = vector.broadcast %cst_70 : f32 to vector<8x128xf32>
    %154 = arith.subf %153, %144 : vector<8x128xf32>
    %155 = arith.addf %154, %149 : vector<8x128xf32>
    %cst_71 = arith.constant 1.000000e-01 : f32
    %156 = vector.broadcast %cst_71 : f32 to vector<8x128xf32>
    %157 = arith.mulf %156, %155 : vector<8x128xf32>
    %158 = arith.addf %144, %157 : vector<8x128xf32>
    %cst_72 = arith.constant 2.000000e-01 : f32
    %159 = vector.broadcast %cst_72 : f32 to vector<8x128xf32>
    %160 = arith.mulf %159, %149 : vector<8x128xf32>
    %161 = arith.subf %149, %160 : vector<8x128xf32>
    %cst_73 = arith.constant 1.000000e+00 : f32
    %162 = vector.broadcast %cst_73 : f32 to vector<8x128xf32>
    %163 = arith.subf %158, %162 : vector<8x128xf32>
    %cst_74 = arith.constant 0.000000e+00 : f32
    %164 = vector.broadcast %cst_74 : f32 to vector<8x128xf32>
    %165 = arith.cmpf ogt, %163, %164 : vector<8x128xf32>
    %166 = arith.extui %165 : vector<8x128xi1> to vector<8x128xi32>
    %167 = arith.sitofp %166 : vector<8x128xi32> to vector<8x128xf32>
    %cst_75 = arith.constant 1.000000e+00 : f32
    %168 = vector.broadcast %cst_75 : f32 to vector<8x128xf32>
    %169 = arith.subf %168, %167 : vector<8x128xf32>
    %170 = arith.mulf %169, %158 : vector<8x128xf32>
    %cst_76 = arith.constant 0.000000e+00 : f32
    %171 = vector.broadcast %cst_76 : f32 to vector<8x128xf32>
    %172 = arith.mulf %167, %171 : vector<8x128xf32>
    %173 = arith.addf %170, %172 : vector<8x128xf32>
    %c40 = arith.constant 40 : index
    %c0_77 = arith.constant 0 : index
    %174 = vector.load %arg6[%c40, %c0_77] : memref<64x128xf32, #tpu.memory_space<vmem>>, vector<8x128xf32>
    %175 = arith.addf %161, %174 : vector<8x128xf32>
    %c0_78 = arith.constant 0 : index
    %c0_79 = arith.constant 0 : index
    %176 = vector.load %arg3[%c0_78, %c0_79] : memref<128x128xf32, #tpu.memory_space<vmem>>, vector<128x128xf32>
    %cst_80 = arith.constant dense<0.000000e+00> : vector<8x128xf32>
    %177 = tpu.matmul %138, %176, %cst_80 {dimension_numbers = #tpu.dot_dimension_numbers<[1], [0], [0], [1], [0, 0, 1, 1], [], []>} : vector<8x128xf32>, vector<128x128xf32>, vector<8x128xf32> -> vector<8x128xf32>
    %178 = arith.addf %175, %177 : vector<8x128xf32>
    %cst_81 = arith.constant 2.170000e-01 : f32
    %179 = vector.broadcast %cst_81 : f32 to vector<8x128xf32>
    %180 = arith.mulf %179, %167 : vector<8x128xf32>
    %181 = arith.addf %152, %180 : vector<8x128xf32>
    %cst_82 = arith.constant 0.000000e+00 : f32
    %182 = vector.broadcast %cst_82 : f32 to vector<8x128xf32>
    %183 = arith.subf %182, %173 : vector<8x128xf32>
    %184 = arith.addf %183, %178 : vector<8x128xf32>
    %cst_83 = arith.constant 1.000000e-01 : f32
    %185 = vector.broadcast %cst_83 : f32 to vector<8x128xf32>
    %186 = arith.mulf %185, %184 : vector<8x128xf32>
    %187 = arith.addf %173, %186 : vector<8x128xf32>
    %cst_84 = arith.constant 2.000000e-01 : f32
    %188 = vector.broadcast %cst_84 : f32 to vector<8x128xf32>
    %189 = arith.mulf %188, %178 : vector<8x128xf32>
    %190 = arith.subf %178, %189 : vector<8x128xf32>
    %cst_85 = arith.constant 1.000000e+00 : f32
    %191 = vector.broadcast %cst_85 : f32 to vector<8x128xf32>
    %192 = arith.subf %187, %191 : vector<8x128xf32>
    %cst_86 = arith.constant 0.000000e+00 : f32
    %193 = vector.broadcast %cst_86 : f32 to vector<8x128xf32>
    %194 = arith.cmpf ogt, %192, %193 : vector<8x128xf32>
    %195 = arith.extui %194 : vector<8x128xi1> to vector<8x128xi32>
    %196 = arith.sitofp %195 : vector<8x128xi32> to vector<8x128xf32>
    %cst_87 = arith.constant 1.000000e+00 : f32
    %197 = vector.broadcast %cst_87 : f32 to vector<8x128xf32>
    %198 = arith.subf %197, %196 : vector<8x128xf32>
    %199 = arith.mulf %198, %187 : vector<8x128xf32>
    %cst_88 = arith.constant 0.000000e+00 : f32
    %200 = vector.broadcast %cst_88 : f32 to vector<8x128xf32>
    %201 = arith.mulf %196, %200 : vector<8x128xf32>
    %202 = arith.addf %199, %201 : vector<8x128xf32>
    %c48 = arith.constant 48 : index
    %c0_89 = arith.constant 0 : index
    %203 = vector.load %arg6[%c48, %c0_89] : memref<64x128xf32, #tpu.memory_space<vmem>>, vector<8x128xf32>
    %204 = arith.addf %190, %203 : vector<8x128xf32>
    %c0_90 = arith.constant 0 : index
    %c0_91 = arith.constant 0 : index
    %205 = vector.load %arg3[%c0_90, %c0_91] : memref<128x128xf32, #tpu.memory_space<vmem>>, vector<128x128xf32>
    %cst_92 = arith.constant dense<0.000000e+00> : vector<8x128xf32>
    %206 = tpu.matmul %167, %205, %cst_92 {dimension_numbers = #tpu.dot_dimension_numbers<[1], [0], [0], [1], [0, 0, 1, 1], [], []>} : vector<8x128xf32>, vector<128x128xf32>, vector<8x128xf32> -> vector<8x128xf32>
    %207 = arith.addf %204, %206 : vector<8x128xf32>
    %cst_93 = arith.constant 1.700000e-01 : f32
    %208 = vector.broadcast %cst_93 : f32 to vector<8x128xf32>
    %209 = arith.mulf %208, %196 : vector<8x128xf32>
    %210 = arith.addf %181, %209 : vector<8x128xf32>
    %cst_94 = arith.constant 0.000000e+00 : f32
    %211 = vector.broadcast %cst_94 : f32 to vector<8x128xf32>
    %212 = arith.subf %211, %202 : vector<8x128xf32>
    %213 = arith.addf %212, %207 : vector<8x128xf32>
    %cst_95 = arith.constant 1.000000e-01 : f32
    %214 = vector.broadcast %cst_95 : f32 to vector<8x128xf32>
    %215 = arith.mulf %214, %213 : vector<8x128xf32>
    %216 = arith.addf %202, %215 : vector<8x128xf32>
    %cst_96 = arith.constant 1.000000e+00 : f32
    %217 = vector.broadcast %cst_96 : f32 to vector<8x128xf32>
    %218 = arith.subf %216, %217 : vector<8x128xf32>
    %cst_97 = arith.constant 0.000000e+00 : f32
    %219 = vector.broadcast %cst_97 : f32 to vector<8x128xf32>
    %220 = arith.cmpf ogt, %218, %219 : vector<8x128xf32>
    %221 = arith.extui %220 : vector<8x128xi1> to vector<8x128xi32>
    %222 = arith.sitofp %221 : vector<8x128xi32> to vector<8x128xf32>
    %cst_98 = arith.constant 1.000000e-01 : f32
    %223 = vector.broadcast %cst_98 : f32 to vector<8x128xf32>
    %224 = arith.mulf %223, %222 : vector<8x128xf32>
    %225 = arith.addf %210, %224 : vector<8x128xf32>
    %c0_99 = arith.constant 0 : index
    %c0_100 = arith.constant 0 : index
    %226 = vector.load %arg4[%c0_99, %c0_100] : memref<128x128xf32, #tpu.memory_space<vmem>>, vector<128x128xf32>
    %cst_101 = arith.constant dense<0.000000e+00> : vector<8x128xf32>
    %227 = tpu.matmul %225, %226, %cst_101 {dimension_numbers = #tpu.dot_dimension_numbers<[1], [0], [0], [1], [0, 0, 1, 1], [], []>} : vector<8x128xf32>, vector<128x128xf32>, vector<8x128xf32> -> vector<8x128xf32>
    %228 = tpu.iota {dimensions = array<i32: 1>} : vector<8x128xi32>
    %c10_i32 = arith.constant 10 : i32
    %229 = vector.broadcast %c10_i32 : i32 to vector<8x128xi32>
    %230 = arith.cmpi slt, %228, %229 : vector<8x128xi32>
    %cst_102 = arith.constant -1.000000e+30 : f32
    %231 = vector.broadcast %cst_102 : f32 to vector<8x128xf32>
    %232 = arith.select %230, %227, %231 : vector<8x128xi1>, vector<8x128xf32>
    %cst_103 = arith.constant dense<0xFF800000> : vector<8xf32>
    %233 = vector.multi_reduction <maximumf>, %232, %cst_103 [1] : vector<8x128xf32> to vector<8xf32>
    %234 = vector.shape_cast %233 : vector<8xf32> to vector<8x1xf32>
    %235 = vector.broadcast %234 : vector<8x1xf32> to vector<8x128xf32>
    %236 = arith.subf %232, %235 : vector<8x128xf32>
    %237 = math.exp %236 : vector<8x128xf32>
    %cst_104 = arith.constant dense<0.000000e+00> : vector<8xf32>
    %238 = vector.multi_reduction <add>, %237, %cst_104 [1] : vector<8x128xf32> to vector<8xf32>
    %239 = vector.shape_cast %238 : vector<8xf32> to vector<8x1xf32>
    %240 = math.log %239 : vector<8x1xf32>
    %241 = vector.broadcast %240 : vector<8x1xf32> to vector<8x128xf32>
    %242 = arith.subf %236, %241 : vector<8x128xf32>
    %c0_105 = arith.constant 0 : index
    %c0_106 = arith.constant 0 : index
    %243 = vector.load %arg5[%c0_105, %c0_106] : memref<8x128xf32, #tpu.memory_space<vmem>>, vector<8x128xf32>
    tpu.vector_store %arg5[%c0_105, %c0_106], %242 {strides = array<i32>} : memref<8x128xf32, #tpu.memory_space<vmem>>, vector<8x128xf32>,
    return
  }
  func.func @transform_0(%arg0: i32) -> (i32, i32) {
    %c0_i32 = arith.constant 0 : i32
    %c0_i32_0 = arith.constant 0 : i32
    %c0_i32_1 = arith.constant 0 : i32
    return %c0_i32, %c0_i32_0 : i32, i32
  }
  func.func @transform_1(%arg0: i32) -> (i32, i32) {
    %c0_i32 = arith.constant 0 : i32
    %c0_i32_0 = arith.constant 0 : i32
    %c0_i32_1 = arith.constant 0 : i32
    return %c0_i32, %c0_i32_0 : i32, i32
  }
  func.func @transform_2(%arg0: i32) -> (i32, i32) {
    %c0_i32 = arith.constant 0 : i32
    %c0_i32_0 = arith.constant 0 : i32
    %c0_i32_1 = arith.constant 0 : i32
    return %c0_i32, %c0_i32_0 : i32, i32
  }
  func.func @transform_3(%arg0: i32) -> (i32, i32) {
    %c0_i32 = arith.constant 0 : i32
    %c0_i32_0 = arith.constant 0 : i32
    %c0_i32_1 = arith.constant 0 : i32
    return %c0_i32, %c0_i32_0 : i32, i32
  }
  func.func @transform_4(%arg0: i32) -> (i32, i32) {
    %c0_i32 = arith.constant 0 : i32
    %c0_i32_0 = arith.constant 0 : i32
    %c0_i32_1 = arith.constant 0 : i32
    return %c0_i32, %c0_i32_0 : i32, i32
  }
}

</mosaic_0001>

<bundles_post_ra>
// kernel: tpu_custom_call.1
= control target key start
LH: loop header
LB: loop body
LE: loop exit
PB: predicated region body
PF: predicated region fallthrough
CT: control target
= control target key end

     0   :  { %9 = vsyncpa [#allocation4], 0  ;;  %s883_s0 = inlined_call_operand.hbm [shape: f32[64,128], index: 0, kind: input, shape index: {}]   ;;  %s884_s1 = inlined_call_operand.hbm [shape: f32[128,128], index: 1, kind: input, shape index: {}]   ;;  %s885_s2 = inlined_call_operand.hbm [shape: f32[128,128], index: 2, kind: input, shape index: {}]   ;;  %s886_s3 = inlined_call_operand.hbm [shape: f32[128,128], index: 3, kind: input, shape index: {}]   ;;  %s887_s4 = inlined_call_operand.hbm [shape: f32[8,128], index: 4, kind: output, shape index: {}]  }
   0x1   :  { %10 = vsyncpa [#allocation7], 0 }
   0x2   :  { %11 = vsyncpa [#allocation10], 0 }
   0x3   :  { %12 = vsyncpa [#allocation5], 0  ;;  %s30_s17 = sshll.u32 %s884_s1, 4  ;;  %s676_s18 = smov [#allocation6]   ;;  %s31_s17 = int_to_ptr.hbm [resolvable:$true] %s30_s17 }
   0x4   :  { %s32_s19 = sshll.u32 %s676_s18, 4  ;;  %s17_s22 = sshll.u32 %s883_s0, 4  ;;  %s33_s19 = int_to_ptr.vmem [resolvable:$true] %s32_s19  ;;  %s18_s22 = int_to_ptr.hbm [resolvable:$true] %s17_s22 }
   0x5   :  { %s677_s23 = smov 128   ;;  %s678_s24 = smov 8  }
   0x6   :  { %38 = dma.hbm_to_vmem [thread:$0]  %s31_s17, 2048, %s33_s19, [#allocation7], %s677_s23, %s677_s23, %s678_s24  }
   0x7   :  { %s679_s25 = smov [#allocation3]   ;;  %s43_s29 = sshll.u32 %s885_s2, 4  ;;  %s44_s29 = int_to_ptr.hbm [resolvable:$true] %s43_s29 }
   0x8   :  { %s19_s26 = sshll.u32 %s679_s25, 4  ;;  %s56_s5 = sshll.u32 %s886_s3, 4  ;;  %s20_s26 = int_to_ptr.vmem [resolvable:$true] %s19_s26  ;;  %s57_s5 = int_to_ptr.hbm [resolvable:$true] %s56_s5 }
   0x9   :  { %25 = dma.hbm_to_vmem [thread:$0]  %s18_s22, 1024, %s20_s26, [#allocation4], %s677_s23, %s677_s23, %s678_s24  }
   0xa   :  { %s680_s6 = smov [#allocation8]   ;;  %s681_s0 = smov [#allocation9]  }
   0xb   :  { %s45_s7 = sshll.u32 %s680_s6, 4  ;;  %s58_s8 = sshll.u32 %s681_s0, 4  ;;  %s46_s7 = int_to_ptr.vmem [resolvable:$true] %s45_s7  ;;  %s59_s8 = int_to_ptr.vmem [resolvable:$true] %s58_s8 }
   0xc   :  { %51 = dma.hbm_to_vmem [thread:$0]  %s44_s29, 2048, %s46_s7, [#allocation7], %s677_s23, %s677_s23, %s678_s24  }
   0xd   :  { %64 = dma.hbm_to_vmem [thread:$0]  %s57_s5, 2048, %s59_s8, [#allocation10], %s677_s23, %s677_s23, %s678_s24  }
   0xe   :  { %668 = dma.done.wait [#allocation4], 1024  }
   0xf   :  { %669 = vsyncadd [#allocation4], 4294966272 }
  0x10   :  { %670 = dma.done.wait [#allocation7], 4096  }
  0x11   :  { %671 = vsyncadd [#allocation7], 4294963200 }
  0x12   :  { %672 = dma.done.wait [#allocation10], 2048  }
  0x13   :  { %673 = vsyncadd [#allocation10], 4294965248  ;;  %v104_v0 = vld [vmem:[#allocation6 + $0x78] sm:$0xff]  ;;  %v103_v2 = vld [vmem:[#allocation6 + $0x70] sm:$0xff]  ;;  %v682_v33 = vmov 0.0   ;;  %v683_v46 = vmov 1.0  }
  0x14   :  { %v722_v1 = vld [vmem:[#allocation8 + $0x78] sm:$0xff]  ;;  %105 = vmatpush.msra.mxu0 %v104_v0  ;;  %v725_v3 = vld [vmem:[#allocation8 + $0x70] sm:$0xff]  ;;  %v102_v4 = vld [vmem:[#allocation6 + $0x68] sm:$0xff]  ;;  %s684_s2 = smov [#allocation11]   ;;  %s504_s11 = sshll.u32 %s887_s4, 4  ;;  %s505_s11 = int_to_ptr.hbm [resolvable:$true] %s504_s11 }
  0x15   :  { %179 = vmatpush.msra.mxu1 %v722_v1  ;;  %v727_v5 = vld [vmem:[#allocation8 + $0x68] sm:$0xff]  ;;  %218 = vmatpush.msra.mxu2 %v722_v1  ;;  %v101_v6 = vld [vmem:[#allocation6 + $0x60] sm:$0xff]  ;;  %v100_v8 = vld [vmem:[#allocation6 + $0x58] sm:$0xff]  ;;  %s502_s3 = sshll.u32 %s684_s2, 4  ;;  %s503_s3 = int_to_ptr.vmem [resolvable:$true] %s502_s3 }
  0x16   :  { %257 = vmatpush.msra.mxu3 %v722_v1  ;;  %106 = vmatpush.msra.mxu0 %v103_v2  ;;  %v732_v7 = vld [vmem:[#allocation8 + $0x60] sm:$0xff]  ;;  %v737_v9 = vld [vmem:[#allocation8 + $0x58] sm:$0xff]  ;;  %v99_v10 = vld [vmem:[#allocation6 + $0x50] sm:$0xff] }
  0x17   :  { %180 = vmatpush.msra.mxu1 %v725_v3  ;;  %219 = vmatpush.msra.mxu2 %v725_v3  ;;  %v742_v11 = vld [vmem:[#allocation8 + $0x50] sm:$0xff]  ;;  %v98_v12 = vld [vmem:[#allocation6 + $0x48] sm:$0xff]  ;;  %v97_v14 = vld [vmem:[#allocation6 + $0x40] sm:$0xff] }
  0x18   :  { %258 = vmatpush.msra.mxu3 %v725_v3  ;;  %107 = vmatpush.msra.mxu0 %v102_v4  ;;  %v747_v13 = vld [vmem:[#allocation8 + $0x48] sm:$0xff]  ;;  %v752_v15 = vld [vmem:[#allocation8 + $0x40] sm:$0xff]  ;;  %v96_v16 = vld [vmem:[#allocation6 + $0x38] sm:$0xff] }
  0x19   :  { %181 = vmatpush.msra.mxu1 %v727_v5  ;;  %220 = vmatpush.msra.mxu2 %v727_v5  ;;  %v757_v17 = vld [vmem:[#allocation8 + $0x38] sm:$0xff]  ;;  %v95_v18 = vld [vmem:[#allocation6 + $0x30] sm:$0xff]  ;;  %v94_v20 = vld [vmem:[#allocation6 + $0x28] sm:$0xff] }
  0x1a   :  { %259 = vmatpush.msra.mxu3 %v727_v5  ;;  %108 = vmatpush.msra.mxu0 %v101_v6  ;;  %v762_v19 = vld [vmem:[#allocation8 + $0x30] sm:$0xff]  ;;  %v767_v21 = vld [vmem:[#allocation8 + $0x28] sm:$0xff]  ;;  %v93_v22 = vld [vmem:[#allocation6 + $0x20] sm:$0xff] }
  0x1b   :  { %182 = vmatpush.msra.mxu1 %v732_v7  ;;  %221 = vmatpush.msra.mxu2 %v732_v7  ;;  %v772_v23 = vld [vmem:[#allocation8 + $0x20] sm:$0xff]  ;;  %v92_v24 = vld [vmem:[#allocation6 + $0x18] sm:$0xff]  ;;  %v91_v26 = vld [vmem:[#allocation6 + $0x10] sm:$0xff] }
  0x1c   :  { %260 = vmatpush.msra.mxu3 %v732_v7  ;;  %109 = vmatpush.msra.mxu0 %v100_v8  ;;  %v777_v25 = vld [vmem:[#allocation8 + $0x18] sm:$0xff]  ;;  %v782_v27 = vld [vmem:[#allocation8 + $0x10] sm:$0xff]  ;;  %v90_v28 = vld [vmem:[#allocation6 + $0x8] sm:$0xff] }
  0x1d   :  { %183 = vmatpush.msra.mxu1 %v737_v9  ;;  %222 = vmatpush.msra.mxu2 %v737_v9  ;;  %v787_v29 = vld [vmem:[#allocation8 + $0x8] sm:$0xff]  ;;  %v89_v30 = vld [vmem:[#allocation6] sm:$0xff]  ;;  %v83_v35 = vld [vmem:[#allocation3 + $0x10] sm:$0xff] }
  0x1e   :  { %261 = vmatpush.msra.mxu3 %v737_v9  ;;  %110 = vmatpush.msra.mxu0 %v99_v10  ;;  %v792_v31 = vld [vmem:[#allocation8] sm:$0xff]  ;;  %v82_v34 = vld [vmem:[#allocation3 + $0x8] sm:$0xff]  ;;  %v84_v36 = vld [vmem:[#allocation3 + $0x18] sm:$0xff] }
  0x1f   :  { %184 = vmatpush.msra.mxu1 %v742_v11  ;;  %223 = vmatpush.msra.mxu2 %v742_v11  ;;  %v81_v32 = vld [vmem:[#allocation3] sm:$0xff]  ;;  %v86_v4 = vld [vmem:[#allocation3 + $0x28] sm:$0xff] }
  0x20   :  { %262 = vmatpush.msra.mxu3 %v742_v11  ;;  %111 = vmatpush.msra.mxu0 %v98_v12  ;;  %v85_v37 = vld [vmem:[#allocation3 + $0x20] sm:$0xff] }
  0x21   :  { %185 = vmatpush.msra.mxu1 %v747_v13  ;;  %224 = vmatpush.msra.mxu2 %v747_v13 }
  0x22   :  { %263 = vmatpush.msra.mxu3 %v747_v13  ;;  %112 = vmatpush.msra.mxu0 %v97_v14 }
  0x23   :  { %186 = vmatpush.msra.mxu1 %v752_v15  ;;  %225 = vmatpush.msra.mxu2 %v752_v15 }
  0x24   :  { %264 = vmatpush.msra.mxu3 %v752_v15  ;;  %113 = vmatpush.msra.mxu0 %v96_v16 }
  0x25   :  { %187 = vmatpush.msra.mxu1 %v757_v17  ;;  %226 = vmatpush.msra.mxu2 %v757_v17 }
  0x26   :  { %265 = vmatpush.msra.mxu3 %v757_v17  ;;  %114 = vmatpush.msra.mxu0 %v95_v18 }
  0x27   :  { %188 = vmatpush.msra.mxu1 %v762_v19  ;;  %227 = vmatpush.msra.mxu2 %v762_v19 }
  0x28   :  { %266 = vmatpush.msra.mxu3 %v762_v19  ;;  %115 = vmatpush.msra.mxu0 %v94_v20 }
  0x29   :  { %189 = vmatpush.msra.mxu1 %v767_v21  ;;  %228 = vmatpush.msra.mxu2 %v767_v21 }
  0x2a   :  { %267 = vmatpush.msra.mxu3 %v767_v21  ;;  %116 = vmatpush.msra.mxu0 %v93_v22 }
  0x2b   :  { %190 = vmatpush.msra.mxu1 %v772_v23  ;;  %229 = vmatpush.msra.mxu2 %v772_v23 }
  0x2c   :  { %268 = vmatpush.msra.mxu3 %v772_v23  ;;  %117 = vmatpush.msra.mxu0 %v92_v24 }
  0x2d   :  { %191 = vmatpush.msra.mxu1 %v777_v25  ;;  %230 = vmatpush.msra.mxu2 %v777_v25 }
  0x2e   :  { %269 = vmatpush.msra.mxu3 %v777_v25  ;;  %118 = vmatpush.msra.mxu0 %v91_v26 }
  0x2f   :  { %192 = vmatpush.msra.mxu1 %v782_v27  ;;  %231 = vmatpush.msra.mxu2 %v782_v27 }
  0x30   :  { %270 = vmatpush.msra.mxu3 %v782_v27  ;;  %119 = vmatpush.msra.mxu0 %v90_v28 }
  0x31   :  { %193 = vmatpush.msra.mxu1 %v787_v29  ;;  %232 = vmatpush.msra.mxu2 %v787_v29 }
  0x32   :  { %271 = vmatpush.msra.mxu3 %v787_v29  ;;  %120 = vmatpush.msra.mxu0 %v89_v30 }
  0x33   :  { %194 = vmatpush.msra.mxu1 %v792_v31  ;;  %121 = vmatmul.f32.vlgmr.msra.gmra.mxu0 %v81_v32 }
  0x34   :  { %195 = vmatmul.f32.vlgmr.msra.gmra.mxu1 %v682_v33  ;;  %233 = vmatpush.msra.mxu2 %v792_v31 }
  0x35   :  { %296 = vmatpush.msrb.mxu1 %v722_v1  ;;  %234 = vmatmul.f32.vlgmr.msra.gmra.mxu2 %v682_v33 }
  0x36   :  { %272 = vmatpush.msra.mxu3 %v792_v31  ;;  %335 = vmatpush.msrb.mxu2 %v722_v1 }
  0x37   :  { %297 = vmatpush.msrb.mxu1 %v725_v3  ;;  %413 = vmatpush.msrb.mxu0 %v722_v1 }
  0x38   :  { %374 = vmatpush.msrb.mxu3 %v722_v1  ;;  %336 = vmatpush.msrb.mxu2 %v725_v3 }
  0x39   :  { %298 = vmatpush.msrb.mxu1 %v727_v5  ;;  %414 = vmatpush.msrb.mxu0 %v725_v3 }
  0x3a   :  { %375 = vmatpush.msrb.mxu3 %v725_v3  ;;  %337 = vmatpush.msrb.mxu2 %v727_v5 }
  0x3b   :  { %299 = vmatpush.msrb.mxu1 %v732_v7  ;;  %124 = vmatmul.f32.gmra.mxu0 %v82_v34 }
  0x3c   :  { %376 = vmatpush.msrb.mxu3 %v727_v5  ;;  %338 = vmatpush.msrb.mxu2 %v732_v7 }
  0x3d   :  { %300 = vmatpush.msrb.mxu1 %v737_v9  ;;  %415 = vmatpush.msrb.mxu0 %v727_v5 }
  0x3e   :  { %377 = vmatpush.msrb.mxu3 %v732_v7  ;;  %339 = vmatpush.msrb.mxu2 %v737_v9 }
  0x3f   :  { %301 = vmatpush.msrb.mxu1 %v742_v11  ;;  %416 = vmatpush.msrb.mxu0 %v732_v7 }
  0x40   :  { %378 = vmatpush.msrb.mxu3 %v737_v9  ;;  %340 = vmatpush.msrb.mxu2 %v742_v11 }
  0x41   :  { %302 = vmatpush.msrb.mxu1 %v747_v13  ;;  %417 = vmatpush.msrb.mxu0 %v737_v9 }
  0x42   :  { %379 = vmatpush.msrb.mxu3 %v742_v11  ;;  %341 = vmatpush.msrb.mxu2 %v747_v13 }
  0x43   :  { %303 = vmatpush.msrb.mxu1 %v752_v15  ;;  %127 = vmatmul.f32.gmra.mxu0 %v83_v35 }
  0x44   :  { %380 = vmatpush.msrb.mxu3 %v747_v13  ;;  %342 = vmatpush.msrb.mxu2 %v752_v15 }
  0x45   :  { %304 = vmatpush.msrb.mxu1 %v757_v17  ;;  %418 = vmatpush.msrb.mxu0 %v742_v11 }
  0x46   :  { %381 = vmatpush.msrb.mxu3 %v752_v15  ;;  %343 = vmatpush.msrb.mxu2 %v757_v17 }
  0x47   :  { %305 = vmatpush.msrb.mxu1 %v762_v19  ;;  %419 = vmatpush.msrb.mxu0 %v747_v13  ;;  %v87_v13 = vld [vmem:[#allocation3 + $0x30] sm:$0xff] }
  0x48   :  { %382 = vmatpush.msrb.mxu3 %v757_v17  ;;  %344 = vmatpush.msrb.mxu2 %v762_v19 }
  0x49   :  { %306 = vmatpush.msrb.mxu1 %v767_v21  ;;  %420 = vmatpush.msrb.mxu0 %v752_v15 }
  0x4a   :  { %383 = vmatpush.msrb.mxu3 %v762_v19  ;;  %345 = vmatpush.msrb.mxu2 %v767_v21 }
  0x4b   :  { %307 = vmatpush.msrb.mxu1 %v772_v23  ;;  %421 = vmatpush.msrb.mxu0 %v757_v17 }
  0x4c   :  { %384 = vmatpush.msrb.mxu3 %v767_v21  ;;  %346 = vmatpush.msrb.mxu2 %v772_v23 }
  0x4d   :  { %308 = vmatpush.msrb.mxu1 %v777_v25  ;;  %422 = vmatpush.msrb.mxu0 %v762_v19 }
  0x4e   :  { %385 = vmatpush.msrb.mxu3 %v772_v23  ;;  %347 = vmatpush.msrb.mxu2 %v777_v25 }
  0x4f   :  { %309 = vmatpush.msrb.mxu1 %v782_v27  ;;  %423 = vmatpush.msrb.mxu0 %v767_v21 }
  0x50   :  { %386 = vmatpush.msrb.mxu3 %v777_v25  ;;  %348 = vmatpush.msrb.mxu2 %v782_v27 }
  0x51   :  { %310 = vmatpush.msrb.mxu1 %v787_v29  ;;  %424 = vmatpush.msrb.mxu0 %v772_v23 }
  0x52   :  { %387 = vmatpush.msrb.mxu3 %v782_v27  ;;  %349 = vmatpush.msrb.mxu2 %v787_v29 }
  0x53   :  { %311 = vmatpush.msrb.mxu1 %v792_v31  ;;  %425 = vmatpush.msrb.mxu0 %v777_v25 }
  0x54   :  { %388 = vmatpush.msrb.mxu3 %v787_v29  ;;  %350 = vmatpush.msrb.mxu2 %v792_v31 }
  0x55   :  { %426 = vmatpush.msrb.mxu0 %v782_v27 }
  0x56   :  { %389 = vmatpush.msrb.mxu3 %v792_v31  ;;  %130 = vmatmul.f32.gmra.mxu0 %v84_v36 }
  0x57   :  { %427 = vmatpush.msrb.mxu0 %v787_v29 }
  0x59   :  { %428 = vmatpush.msrb.mxu0 %v792_v31 }
  0x5e   :  { %133 = vmatmul.f32.gmra.mxu0 %v85_v37 }
  0x66   :  { %136 = vmatmul.f32.gmra.mxu0 %v86_v4 }
  0x6e   :  { %139 = vmatmul.f32.gmra.mxu0 %v87_v13 }
  0xb0   :  { %v122_v38 = vpop.f32.mrf.mxu0 }
  0xb1   :  { %v196_v39 = vpop.f32.mrf.mxu1 }
  0xb2   :  { %v199_v40 = vadd.f32 %v196_v39, %v122_v38 }
  0xb4   :  { %v204_v41 = vmul.f32 0.1, %v199_v40  ;;  %v206_v42 = vmul.f32 0.2, %v199_v40 }
  0xb6   :  { %v516_v43 = vadd.f32 -1.0, %v204_v41  ;;  %v207_v47 = vsub.f32 %v199_v40, %v206_v42 }
  0xb8   :  { %vm209_vm0 = vcmp.gt.f32.partialorder %v516_v43, 0.0  ;;  %v125_v44 = vpop.f32.mrf.mxu0  ;;  %v235_v52 = vpop.f32.mrf.mxu2  ;;  %v88_v43 = vld [vmem:[#allocation3 + $0x38] sm:$0xff] }
  0xb9   :  { %v517_v45 = vsel %vm209_vm0, 1.0, %v682_v33  ;;  %520 = vmatmul.msk.f32.vlgmr.msra.gmra.mxu3 %vm209_vm0, %v683_v46  ;;  %v217_v49 = vadd.f32 %v207_v47, %v125_v44  ;;  %142 = vmatmul.f32.gmra.mxu0 %v88_v43 }
  0xba   :  { %v212_v48 = vsub.f32 1.0, %v517_v45  ;;  %v214_v51 = vmul.f32 0.0, %v517_v45  ;;  %v239_v61 = vmul.f32 0.2685817, %v517_v45 }
  0xbb   :  { %v238_v54 = vadd.f32 %v235_v52, %v217_v49  ;;  %v460_v49 = vld [vmem:[#allocation9 + $0x70] sm:$0xff] }
  0xbc   :  { %v213_v50 = vmul.f32 %v212_v48, %v204_v41  ;;  %v461_v48 = vld [vmem:[#allocation9 + $0x78] sm:$0xff] }
  0xbd   :  { %v245_v5 = vmul.f32 0.2, %v238_v54  ;;  %462 = vmatpush.msra.mxu1 %v461_v48 }
  0xbe   :  { %v215_v53 = vadd.f32 %v214_v51, %v213_v50  ;;  %v459_v51 = vld [vmem:[#allocation9 + $0x68] sm:$0xff] }
  0xbf   :  { %v246_v6 = vsub.f32 %v238_v54, %v245_v5  ;;  %463 = vmatpush.msra.mxu1 %v460_v49  ;;  %v482_v49 = vlaneseq }
  0xc0   :  { %v241_v55 = vsub.f32 0.0, %v215_v53  ;;  %v128_v7 = vpop.f32.mrf.mxu0 }
  0xc1   :  { %v256_v8 = vadd.f32 %v246_v6, %v128_v7  ;;  %464 = vmatpush.msra.mxu1 %v459_v51 }
  0xc2   :  { %v242_v56 = vadd.f32 %v241_v55, %v238_v54 }
  0xc4   :  { %v243_v57 = vmul.f32 0.1, %v242_v56 }
  0xc6   :  { %v244_v58 = vadd.f32 %v243_v57, %v215_v53 }
  0xc8   :  { %v518_v59 = vadd.f32 -1.0, %v244_v58 }
  0xca   :  { %vm248_vm1 = vcmp.gt.f32.partialorder %v518_v59, 0.0 }
  0xcb   :  { %v519_v60 = vsel %vm248_vm1, 1.0, %v682_v33  ;;  %523 = vmatmul.msk.f32.vlgmr.msrb.gmra.mxu1 %vm248_vm1, %v683_v46 }
  0xcc   :  { %v251_v62 = vsub.f32 1.0, %v519_v60  ;;  %v278_v63 = vmul.f32 0.269297, %v519_v60  ;;  %v253_v1 = vmul.f32 0.0, %v519_v60 }
  0xce   :  { %v252_v0 = vmul.f32 %v251_v62, %v244_v58  ;;  %v279_v2 = vadd.f32 %v278_v63, %v239_v61 }
  0xd0   :  { %v254_v3 = vadd.f32 %v253_v1, %v252_v0 }
  0xd2   :  { %v280_v11 = vsub.f32 0.0, %v254_v3 }
  0xd3   :  { %v131_v22 = vpop.f32.mrf.mxu0 }
  0xdb   :  { %v134_v47 = vpop.f32.mrf.mxu0 }
  0xe3   :  { %v137_v0 = vpop.f32.mrf.mxu0 }
 0x13c   :  { %v274_v9 = vpop.f32.mrf.mxu3 }
 0x13d   :  { %v277_v10 = vadd.f32 %v274_v9, %v256_v8 }
 0x13f   :  { %v281_v12 = vadd.f32 %v280_v11, %v277_v10  ;;  %v284_v16 = vmul.f32 0.2, %v277_v10 }
 0x141   :  { %v282_v14 = vmul.f32 0.1, %v281_v12  ;;  %v285_v19 = vsub.f32 %v277_v10, %v284_v16  ;;  %v457_v16 = vld [vmem:[#allocation9 + $0x58] sm:$0xff] }
 0x143   :  { %v283_v15 = vadd.f32 %v282_v14, %v254_v3  ;;  %v295_v27 = vadd.f32 %v285_v19, %v131_v22  ;;  %v140_v19 = vpop.f32.mrf.mxu0  ;;  %v453_v22 = vld [vmem:[#allocation9 + $0x38] sm:$0xff] }
 0x145   :  { %v521_v17 = vadd.f32 -1.0, %v283_v15 }
 0x147   :  { %vm287_vm2 = vcmp.gt.f32.partialorder %v521_v17, 0.0  ;;  %v456_v17 = vld [vmem:[#allocation9 + $0x50] sm:$0xff] }
 0x148   :  { %v522_v18 = vsel %vm287_vm2, 1.0, %v682_v33  ;;  %526 = vmatmul.msk.f32.vlgmr.msrb.gmra.mxu2 %vm287_vm2, %v683_v46  ;;  %v313_v26 = vpop.f32.mrf.mxu1 }
 0x149   :  { %v290_v20 = vsub.f32 1.0, %v522_v18  ;;  %v317_v21 = vmul.f32 0.26281, %v522_v18  ;;  %v292_v24 = vmul.f32 0.0, %v522_v18  ;;  %v316_v29 = vadd.f32 %v313_v26, %v295_v27  ;;  %v455_v18 = vld [vmem:[#allocation9 + $0x48] sm:$0xff]  ;;  %v449_v26 = vld [vmem:[#allocation9 + $0x18] sm:$0xff] }
 0x14a   :  { %v448_v27 = vld [vmem:[#allocation9 + $0x10] sm:$0xff] }
 0x14b   :  { %v291_v23 = vmul.f32 %v290_v20, %v283_v15  ;;  %v318_v25 = vadd.f32 %v317_v21, %v279_v2  ;;  %v323_v44 = vmul.f32 0.2, %v316_v29  ;;  %v458_v15 = vld [vmem:[#allocation9 + $0x60] sm:$0xff]  ;;  %v143_v20 = vpop.f32.mrf.mxu0 }
 0x14c   :  { %465 = vmatpush.msra.mxu1 %v458_v15  ;;  %v454_v21 = vld [vmem:[#allocation9 + $0x40] sm:$0xff] }
 0x14d   :  { %v293_v28 = vadd.f32 %v292_v24, %v291_v23  ;;  %v324_v45 = vsub.f32 %v316_v29, %v323_v44  ;;  %v452_v23 = vld [vmem:[#allocation9 + $0x30] sm:$0xff]  ;;  %v451_v24 = vld [vmem:[#allocation9 + $0x28] sm:$0xff] }
 0x14e   :  { %466 = vmatpush.msra.mxu1 %v457_v16 }
 0x14f   :  { %v319_v30 = vsub.f32 0.0, %v293_v28  ;;  %v334_v50 = vadd.f32 %v324_v45, %v134_v47 }
 0x150   :  { %467 = vmatpush.msra.mxu1 %v456_v17 }
 0x151   :  { %v320_v31 = vadd.f32 %v319_v30, %v316_v29  ;;  %v446_v29 = vld [vmem:[#allocation9] sm:$0xff] }
 0x152   :  { %468 = vmatpush.msra.mxu1 %v455_v18 }
 0x153   :  { %v321_v32 = vmul.f32 0.1, %v320_v31 }
 0x154   :  { %469 = vmatpush.msra.mxu1 %v454_v21 }
 0x155   :  { %v322_v34 = vadd.f32 %v321_v32, %v293_v28  ;;  %v447_v28 = vld [vmem:[#allocation9 + $0x8] sm:$0xff] }
 0x156   :  { %470 = vmatpush.msra.mxu1 %v453_v22 }
 0x157   :  { %v524_v35 = vadd.f32 -1.0, %v322_v34 }
 0x158   :  { %471 = vmatpush.msra.mxu1 %v452_v23 }
 0x159   :  { %vm326_vm3 = vcmp.gt.f32.partialorder %v524_v35, 0.0 }
 0x15a   :  { %v525_v36 = vsel %vm326_vm3, 1.0, %v682_v33  ;;  %529 = vmatmul.msk.f32.vlgmr.msrb.gmra.mxu3 %vm326_vm3, %v683_v46  ;;  %472 = vmatpush.msra.mxu1 %v451_v24 }
 0x15b   :  { %v329_v37 = vsub.f32 1.0, %v525_v36  ;;  %v356_v38 = vmul.f32 0.2465, %v525_v36  ;;  %v331_v40 = vmul.f32 0.0, %v525_v36 }
 0x15d   :  { %v330_v39 = vmul.f32 %v329_v37, %v322_v34  ;;  %v357_v41 = vadd.f32 %v356_v38, %v318_v25  ;;  %v450_v25 = vld [vmem:[#allocation9 + $0x20] sm:$0xff] }
 0x15e   :  { %473 = vmatpush.msra.mxu1 %v450_v25 }
 0x15f   :  { %v332_v42 = vadd.f32 %v331_v40, %v330_v39 }
 0x160   :  { %474 = vmatpush.msra.mxu1 %v449_v26 }
 0x161   :  { %v358_v54 = vsub.f32 0.0, %v332_v42 }
 0x162   :  { %475 = vmatpush.msra.mxu1 %v448_v27 }
 0x164   :  { %476 = vmatpush.msra.mxu1 %v447_v28 }
 0x166   :  { %477 = vmatpush.msra.mxu1 %v446_v29 }
 0x1cb   :  { %v352_v52 = vpop.f32.mrf.mxu2 }
 0x1cc   :  { %v355_v53 = vadd.f32 %v352_v52, %v334_v50  ;;  %v483_v50 = vand.u32 127, %v482_v49 }
 0x1ce   :  { %v359_v55 = vadd.f32 %v358_v54, %v355_v53  ;;  %v362_v58 = vmul.f32 0.2, %v355_v53  ;;  %vm484_vm7 = vcmp.lt.s32.totalorder %v483_v50, 10 }
 0x1d0   :  { %v360_v56 = vmul.f32 0.1, %v359_v55  ;;  %v363_v61 = vsub.f32 %v355_v53, %v362_v58 }
 0x1d2   :  { %v361_v57 = vadd.f32 %v360_v56, %v332_v42  ;;  %v373_v4 = vadd.f32 %v363_v61, %v137_v0 }
 0x1d4   :  { %v527_v59 = vadd.f32 -1.0, %v361_v57 }
 0x1d6   :  { %vm365_vm4 = vcmp.gt.f32.partialorder %v527_v59, 0.0 }
 0x1d7   :  { %v528_v60 = vsel %vm365_vm4, 1.0, %v682_v33  ;;  %532 = vmatmul.msk.f32.vlgmr.msrb.gmra.mxu0 %vm365_vm4, %v683_v46 }
 0x1d8   :  { %v368_v62 = vsub.f32 1.0, %v528_v60  ;;  %v395_v63 = vmul.f32 0.217, %v528_v60  ;;  %v370_v2 = vmul.f32 0.0, %v528_v60 }
 0x1da   :  { %v369_v1 = vmul.f32 %v368_v62, %v361_v57  ;;  %v396_v3 = vadd.f32 %v395_v63, %v357_v41 }
 0x1dc   :  { %v371_v5 = vadd.f32 %v370_v2, %v369_v1 }
 0x1dd   :  { %v391_v6 = vpop.f32.mrf.mxu3 }
 0x1de   :  { %v394_v7 = vadd.f32 %v391_v6, %v373_v4  ;;  %v397_v8 = vsub.f32 0.0, %v371_v5 }
 0x1e0   :  { %v398_v9 = vadd.f32 %v397_v8, %v394_v7  ;;  %v401_v31 = vmul.f32 0.2, %v394_v7 }
 0x1e2   :  { %v399_v10 = vmul.f32 0.1, %v398_v9  ;;  %v402_v34 = vsub.f32 %v394_v7, %v401_v31 }
 0x1e4   :  { %v400_v11 = vadd.f32 %v399_v10, %v371_v5  ;;  %v412_v37 = vadd.f32 %v402_v34, %v140_v19 }
 0x1e6   :  { %v530_v12 = vadd.f32 -1.0, %v400_v11 }
 0x1e8   :  { %vm404_vm5 = vcmp.gt.f32.partialorder %v530_v12, 0.0 }
 0x1e9   :  { %v531_v13 = vsel %vm404_vm5, 1.0, %v682_v33 }
 0x1ea   :  { %v434_v46 = vmul.f32 0.17, %v531_v13  ;;  %v407_v30 = vsub.f32 1.0, %v531_v13  ;;  %v409_v35 = vmul.f32 0.0, %v531_v13 }
 0x1ec   :  { %v435_v14 = vadd.f32 %v434_v46, %v396_v3  ;;  %v408_v32 = vmul.f32 %v407_v30, %v400_v11 }
 0x1ee   :  { %v410_v36 = vadd.f32 %v409_v35, %v408_v32 }
 0x1f0   :  { %v436_v40 = vsub.f32 0.0, %v410_v36 }
 0x254   :  { %v430_v38 = vpop.f32.mrf.mxu0 }
 0x255   :  { %v433_v39 = vadd.f32 %v430_v38, %v412_v37 }
 0x257   :  { %v437_v41 = vadd.f32 %v436_v40, %v433_v39 }
 0x259   :  { %v438_v42 = vmul.f32 0.1, %v437_v41 }
 0x25b   :  { %v439_v43 = vadd.f32 %v438_v42, %v410_v36 }
 0x25d   :  { %v533_v44 = vadd.f32 -1.0, %v439_v43 }
 0x25f   :  { %vm441_vm6 = vcmp.gt.f32.partialorder %v533_v44, 0.0 }
 0x260   :  { %v534_v45 = vsel %vm441_vm6, 1.0, %v682_v33 }
 0x261   :  { %v444_v47 = vmul.f32 0.1, %v534_v45 }
 0x263   :  { %v445_v48 = vadd.f32 %v444_v47, %v435_v14 }
 0x265   :  { %478 = vmatmul.f32.vlgmr.msra.gmra.mxu1 %v445_v48 }
 0x2e2   :  { %v479_v51 = vpop.f32.mrf.mxu1 }
 0x2e3   :  { %v485_v52 = vsel %vm484_vm7, %v479_v51, -1e+30 }
 0x2e4   :  { %486 = vmax.xlane.f32.xlu0 %v485_v52 }
 0x357   :  { %v487_v53 = vpop.xlane.xlu0 %486 }
 0x358   :  { %v488_v54 = vsub.f32 %v485_v52, %v487_v53 }
 0x35a   :  { %v489_v55 = vmul.f32 1.442695, %v488_v54 }
 0x35c   :  { %544 = vpow2.f32 %v489_v55 }
 0x362   :  { %v545_v56 = vpop.eup %544 }
 0x363   :  { %491 = vadd.xlane.f32.xlu0 %v545_v56 }
 0x3d6   :  { %v492_v57 = vpop.xlane.xlu0 %491 }
 0x3d7   :  { %546 = vlog2.f32 %v492_v57 }
 0x3dd   :  { %v547_v58 = vpop.eup %546 }
 0x3de   :  { %v494_v33 = vmul.f32 0.6931472, %v547_v58 }
 0x3e0   :  { %v495_v59 = vsub.f32 %v488_v54, %v494_v33 }
 0x3e2   :  { %496 = vst [vmem:[#allocation11] sm:$0xff] %v495_v59 }
 0x3e3   :  { %507 = dma.vmem_to_hbm [thread:$0]  %s503_s3, 128, %s505_s11, [#allocation5]  }
 0x3e4   :  { %674 = dma.done.wait [#allocation5], 128  }
 0x3e5   :  { %675 = vsyncadd [#allocation5], 4294967168 }
 0x3e6   :  { %512 = vsyncpa [#allocation4], 1 }
 0x3e7   :  { %513 = vsyncpa [#allocation7], 1 }
 0x3e8   :  { %514 = vsyncpa [#allocation10], 1 }
 0x3e9   :  { %515 = vsyncpa [#allocation5], 1 }

</bundles_post_ra>
